<compile_context>
chip_gen: v7x
topology: tpu7x:2x2x1
jax: 0.10.0
libtpu: 0.0.40
codegen_flags: <defaults>
</compile_context>

<pallas_src>
import jax
import jax.numpy as jnp
from jax import lax
from jax.experimental import pallas as pl
from jax.experimental.pallas import tpu as pltpu


LN_EPS = 1e-5  # nn.LayerNorm default


def _round_up(a, m):
    return ((a + m - 1) // m) * m


def make_mlp_kernel(h_real):
    """Returns a kernel closed over the *real* (unpadded) hidden width."""
    inv_h = 1.0 / float(h_real)

    def mlp_kernel(x_ref, w1_ref, b1_ref, g_ref, beta_ref, w2_ref, b2_ref, o_ref):
        # x arrives in its original dtype; cast to bf16 on the VPU (hidden
        # under DMA/MXU) instead of paying a separate wrapper cast pass.
        x = x_ref[...].astype(jnp.bfloat16)

        # ---- linear1: (TB, F) @ (F, Hp), bf16 inputs, f32 accumulation ----
        h = jnp.dot(x, w1_ref[...], preferred_element_type=jnp.float32)
        h = h + b1_ref[...]                      # b1 padded with zeros

        # ---- LayerNorm over the real hidden units only ----
        # Padded lanes of h are exactly 0 (w1 pad cols and b1 pad are zero),
        # so plain sums divided by h_real give the correct mean; the variance
        # masks the padded lanes explicitly.
        lane = lax.broadcasted_iota(jnp.int32, h.shape, dimension=1)
        valid = lane < h_real
        mean = jnp.sum(h, axis=-1, keepdims=True) * inv_h
        centered = jnp.where(valid, h - mean, 0.0)
        var = jnp.sum(centered * centered, axis=-1, keepdims=True) * inv_h
        inv = lax.rsqrt(var + LN_EPS)            # EUP
        # gamma/beta are zero in padded lanes -> padded lanes stay exactly 0.
        h = centered * (inv * g_ref[...]) + beta_ref[...]

        # ---- GELU (exact erf form, matches torch.nn.GELU default) ----
        h = 0.5 * h * (1.0 + lax.erf(h * 0.7071067811865476))

        # ---- linear2: (TB, Hp) @ (Hp, Op), bf16 inputs, f32 accumulation ----
        out = jnp.dot(h.astype(jnp.bfloat16), w2_ref[...],
                      preferred_element_type=jnp.float32)
        o_ref[...] = (out + b2_ref[...]).astype(o_ref.dtype)

    return mlp_kernel


def prepare_params(w1, b1, gamma, beta, w2, b2):
    """Pad / cast the parameters ONCE (hoisted out of the per-call hot path).

    Weights stored (in, out); biases / LN params any shape broadcastable to
    (1, H) / (1, O)."""
    F, H = w1.shape
    O = w2.shape[1]
    F_pad = _round_up(F, 128)
    H_pad = _round_up(H, 128)
    O_pad = _round_up(O, 128)

    w1p = jnp.zeros((F_pad, H_pad), jnp.bfloat16).at[:F, :H].set(w1.astype(jnp.bfloat16))
    b1p = jnp.zeros((1, H_pad), jnp.float32).at[:, :H].set(jnp.reshape(b1, (1, H)))
    gp = jnp.zeros((1, H_pad), jnp.float32).at[:, :H].set(jnp.reshape(gamma, (1, H)))
    btp = jnp.zeros((1, H_pad), jnp.float32).at[:, :H].set(jnp.reshape(beta, (1, H)))
    w2p = jnp.zeros((H_pad, O_pad), jnp.bfloat16).at[:H, :O].set(w2.astype(jnp.bfloat16))
    b2p = jnp.zeros((1, O_pad), jnp.float32).at[:, :O].set(jnp.reshape(b2, (1, O)))

    return dict(w1=w1p, b1=b1p, gamma=gp, beta=btp, w2=w2p, b2=b2p,
                f_real=F, h_real=H, o_real=O,
                f_pad=F_pad, h_pad=H_pad, o_pad=O_pad)


def _pick_batch_tile(B, F_pad):
    """Largest sublane-aligned batch tile within a conservative VMEM budget
    (per-grid-step overhead dominates this mem-bound kernel at small tiles),
    while keeping >=2 grid steps for mid/large batches (v7x megacore)."""
    # ~8 MiB budget for the double-buffered f32 x tile: fits v5e's 16 MiB
    # scoped-VMEM default and leaves ample room on v7x's 64 MiB physical VMEM.
    tb_max = (8 * 1024 * 1024) // (2 * F_pad * 4)
    tb_max = max(128, min(512, (tb_max // 8) * 8))
    if B >= 2 * tb_max:
        tb = tb_max
    elif B >= 32:
        tb = _round_up(pl.cdiv(B, 2), 16)     # guarantees >=2 grid steps
    else:
        tb = _round_up(max(B, 1), 16)         # 16-row tile (bf16 sublane pack)
    return tb


def mlp_forward(x_nchw, params):
    """x_nchw: (B, C, H, W); params from prepare_params(). Returns (B, O) f32."""
    B = x_nchw.shape[0]
    x2d = x_nchw.reshape(B, -1)               # nn.Flatten on NCHW
    F = x2d.shape[1]
    assert F == params["f_real"], "feature size mismatch with prepared params"

    F_pad, H_pad, O_pad = params["f_pad"], params["h_pad"], params["o_pad"]
    H, O = params["h_real"], params["o_real"]

    tb = _pick_batch_tile(B, F_pad)
    B_pad = _round_up(B, tb)

    # x goes straight into the kernel (no wrapper bf16 cast); only pad when
    # the batch doesn't divide the tile or F isn't lane-aligned.
    xp = x2d
    if B_pad != B or F_pad != F:
        # TODO(synk): a ragged last tile could avoid this copy entirely.
        xp = jnp.zeros((B_pad, F_pad), x2d.dtype).at[:B, :F].set(x2d)

    grid = (B_pad // tb,)

    # Rough VMEM budget: x/out double-buffered, params single-buffered.
    vmem_bytes = 2 * tb * F_pad * 4 + 2 * tb * O_pad * 4
    vmem_bytes += F_pad * H_pad * 2 + H_pad * O_pad * 2 + 4 * H_pad * 4 + O_pad * 4
    vmem_limit = int(min(max(2 * vmem_bytes + (4 << 20), 16 << 20), 48 << 20))

    const_map = lambda i: (0, 0)

    def weight_spec(shape):
        # Constant block index -> second pipeline buffer is dead VMEM.
        return pl.BlockSpec(shape, const_map, pipeline_mode=pl.Buffered(1))

    out = pl.pallas_call(
        make_mlp_kernel(H),
        out_shape=jax.ShapeDtypeStruct((B_pad, O_pad), jnp.float32),
        grid=grid,
        in_specs=[
            pl.BlockSpec((tb, F_pad), lambda i: (i, 0)),   # x streams (f32)
            weight_spec((F_pad, H_pad)),                   # w1 (VMEM-resident)
            weight_spec((1, H_pad)),                       # b1
            weight_spec((1, H_pad)),                       # gamma
            weight_spec((1, H_pad)),                       # beta
            weight_spec((H_pad, O_pad)),                   # w2 (VMEM-resident)
            weight_spec((1, O_pad)),                       # b2
        ],
        out_specs=pl.BlockSpec((tb, O_pad), lambda i: (i, 0)),
        compiler_params=pltpu.CompilerParams(
            dimension_semantics=("parallel",),
            vmem_limit_bytes=vmem_limit,
        ),
    )(xp, params["w1"], params["b1"], params["gamma"], params["beta"],
      params["w2"], params["b2"])

    # Consumers that tolerate the padded (B_pad, O_pad) slab can skip this
    # slice (it is an extra HBM pass); kept here for exact module semantics.
    return out[:B, :O]


def reference_forward(x_nchw, w1, b1, gamma, beta, w2, b2):
    """Pure-JAX reference with the same bf16 matmul quantization points."""
    B = x_nchw.shape[0]
    x = x_nchw.reshape(B, -1).astype(jnp.bfloat16)
    h = jnp.dot(x, w1.astype(jnp.bfloat16),
                preferred_element_type=jnp.float32) + b1
    mean = jnp.mean(h, axis=-1, keepdims=True)
    var = jnp.mean((h - mean) ** 2, axis=-1, keepdims=True)
    h = (h - mean) / jnp.sqrt(var + LN_EPS) * gamma + beta
    h = 0.5 * h * (1.0 + lax.erf(h / jnp.sqrt(2.0)))
    return jnp.dot(h.astype(jnp.bfloat16), w2.astype(jnp.bfloat16),
                   preferred_element_type=jnp.float32) + b2


if __name__ == "__main__":
    # Small shapes consistent with the module: x is (B, C, H, W); flattening
    # gives in_features = C*H*W.
    B, C, Hs, Ws = 2, 4, 16, 16
    in_features = C * Hs * Ws       # 1024
    hidden_features = 32
    out_features = 16

    key = jax.random.PRNGKey(0)
    kx, k1, k2, k3, k4 = jax.random.split(key, 5)

    x = jax.random.normal(kx, (B, C, Hs, Ws), dtype=jnp.float32)

    # Deterministic parameter init (shapes from the module's __init__).
    # Stored as (in, out) so the kernel does x @ W.
    w1 = jax.random.normal(k1, (in_features, hidden_features), jnp.float32) * 0.02
    b1 = jax.random.normal(k2, (1, hidden_features), jnp.float32) * 0.02
    gamma = jnp.ones((1, hidden_features), jnp.float32)
    beta = jnp.zeros((1, hidden_features), jnp.float32)
    w2 = jax.random.normal(k3, (hidden_features, out_features), jnp.float32) * 0.02
    b2 = jax.random.normal(k4, (1, out_features), jnp.float32) * 0.02

    # Pad / cast parameters once (outside the per-forward hot path).
    params = prepare_params(w1, b1, gamma, beta, w2, b2)

    out = mlp_forward(x, params)
    out = jax.block_until_ready(out)

    ref = reference_forward(x, w1, b1, gamma, beta, w2, b2)
    assert out.shape == (B, out_features)
    assert jnp.allclose(out, ref, atol=3e-3, rtol=2e-2), "mismatch vs reference"

    print("KERNEL_OK")
</pallas_src>

<mosaic_0001>
module attributes {stable_mosaic.version = 11 : i64} {
  func.func @mlp_kernel(%arg0: i32, %arg1: memref<16x1024xf32, #tpu.memory_space<vmem>>, %arg2: memref<1024x128xbf16, #tpu.memory_space<vmem>>, %arg3: memref<1x128xf32, #tpu.memory_space<vmem>>, %arg4: memref<1x128xf32, #tpu.memory_space<vmem>>, %arg5: memref<1x128xf32, #tpu.memory_space<vmem>>, %arg6: memref<128x128xbf16, #tpu.memory_space<vmem>>, %arg7: memref<1x128xf32, #tpu.memory_space<vmem>>, %arg8: memref<16x128xf32, #tpu.memory_space<vmem>>) attributes {dimension_semantics = [#tpu.dimension_semantics<parallel>], iteration_bounds = array<i64: 1>, scalar_prefetch = 0 : i64, scratch_operands = 0 : i64, tpu.core_type = #tpu.core_type<tc>, window_params = [{transform_indices = @transform_0, window_bounds = array<i64: 16, 1024>}, {pipeline_mode = #tpu.pipeline_mode<synchronous>, transform_indices = @transform_1, window_bounds = array<i64: 1024, 128>}, {pipeline_mode = #tpu.pipeline_mode<synchronous>, transform_indices = @transform_2, window_bounds = array<i64: 1, 128>}, {pipeline_mode = #tpu.pipeline_mode<synchronous>, transform_indices = @transform_3, window_bounds = array<i64: 1, 128>}, {pipeline_mode = #tpu.pipeline_mode<synchronous>, transform_indices = @transform_4, window_bounds = array<i64: 1, 128>}, {pipeline_mode = #tpu.pipeline_mode<synchronous>, transform_indices = @transform_5, window_bounds = array<i64: 128, 128>}, {pipeline_mode = #tpu.pipeline_mode<synchronous>, transform_indices = @transform_6, window_bounds = array<i64: 1, 128>}, {transform_indices = @transform_7, window_bounds = array<i64: 16, 128>}]} {
    %c0 = arith.constant 0 : index
    %c0_0 = arith.constant 0 : index
    %0 = vector.load %arg1[%c0, %c0_0] : memref<16x1024xf32, #tpu.memory_space<vmem>>, vector<16x1024xf32>
    %1 = arith.truncf %0 : vector<16x1024xf32> to vector<16x1024xbf16>
    %c0_1 = arith.constant 0 : index
    %c0_2 = arith.constant 0 : index
    %2 = vector.load %arg2[%c0_1, %c0_2] : memref<1024x128xbf16, #tpu.memory_space<vmem>>, vector<1024x128xbf16>
    %cst = arith.constant dense<0.000000e+00> : vector<16x128xf32>
    %3 = tpu.matmul %1, %2, %cst {dimension_numbers = #tpu.dot_dimension_numbers<[1], [0], [0], [1], [0, 0, 1, 1], [], []>} : vector<16x1024xbf16>, vector<1024x128xbf16>, vector<16x128xf32> -> vector<16x128xf32>
    %c0_3 = arith.constant 0 : index
    %c0_4 = arith.constant 0 : index
    %4 = vector.load %arg3[%c0_3, %c0_4] : memref<1x128xf32, #tpu.memory_space<vmem>>, vector<1x128xf32>
    %5 = vector.broadcast %4 : vector<1x128xf32> to vector<16x128xf32>
    %6 = arith.addf %3, %5 : vector<16x128xf32>
    %7 = tpu.iota {dimensions = array<i32: 1>} : vector<16x128xi32>
    %c32_i32 = arith.constant 32 : i32
    %8 = vector.broadcast %c32_i32 : i32 to vector<16x128xi32>
    %9 = arith.cmpi slt, %7, %8 : vector<16x128xi32>
    %cst_5 = arith.constant dense<0.000000e+00> : vector<16xf32>
    %10 = vector.multi_reduction <add>, %6, %cst_5 [1] : vector<16x128xf32> to vector<16xf32>
    %11 = vector.shape_cast %10 : vector<16xf32> to vector<16x1xf32>
    %cst_6 = arith.constant 3.125000e-02 : f32
    %12 = vector.broadcast %cst_6 : f32 to vector<16x1xf32>
    %13 = arith.mulf %11, %12 : vector<16x1xf32>
    %14 = vector.broadcast %13 : vector<16x1xf32> to vector<16x128xf32>
    %15 = arith.subf %6, %14 : vector<16x128xf32>
    %cst_7 = arith.constant 0.000000e+00 : f32
    %16 = vector.broadcast %cst_7 : f32 to vector<16x128xf32>
    %17 = arith.select %9, %15, %16 : vector<16x128xi1>, vector<16x128xf32>
    %18 = arith.mulf %17, %17 : vector<16x128xf32>
    %cst_8 = arith.constant dense<0.000000e+00> : vector<16xf32>
    %19 = vector.multi_reduction <add>, %18, %cst_8 [1] : vector<16x128xf32> to vector<16xf32>
    %20 = vector.shape_cast %19 : vector<16xf32> to vector<16x1xf32>
    %cst_9 = arith.constant 3.125000e-02 : f32
    %21 = vector.broadcast %cst_9 : f32 to vector<16x1xf32>
    %22 = arith.mulf %20, %21 : vector<16x1xf32>
    %cst_10 = arith.constant 9.99999974E-6 : f32
    %23 = vector.broadcast %cst_10 : f32 to vector<16x1xf32>
    %24 = arith.addf %22, %23 : vector<16x1xf32>
    %25 = math.rsqrt %24 : vector<16x1xf32>
    %c0_11 = arith.constant 0 : index
    %c0_12 = arith.constant 0 : index
    %26 = vector.load %arg4[%c0_11, %c0_12] : memref<1x128xf32, #tpu.memory_space<vmem>>, vector<1x128xf32>
    %27 = vector.broadcast %25 : vector<16x1xf32> to vector<16x128xf32>
    %28 = vector.broadcast %26 : vector<1x128xf32> to vector<16x128xf32>
    %29 = arith.mulf %27, %28 : vector<16x128xf32>
    %30 = arith.mulf %17, %29 : vector<16x128xf32>
    %c0_13 = arith.constant 0 : index
    %c0_14 = arith.constant 0 : index
    %31 = vector.load %arg5[%c0_13, %c0_14] : memref<1x128xf32, #tpu.memory_space<vmem>>, vector<1x128xf32>
    %32 = vector.broadcast %31 : vector<1x128xf32> to vector<16x128xf32>
    %33 = arith.addf %30, %32 : vector<16x128xf32>
    %cst_15 = arith.constant 5.000000e-01 : f32
    %34 = vector.broadcast %cst_15 : f32 to vector<16x128xf32>
    %35 = arith.mulf %34, %33 : vector<16x128xf32>
    %cst_16 = arith.constant 0.707106769 : f32
    %36 = vector.broadcast %cst_16 : f32 to vector<16x128xf32>
    %37 = arith.mulf %33, %36 : vector<16x128xf32>
    %38 = math.erf %37 : vector<16x128xf32>
    %cst_17 = arith.constant 1.000000e+00 : f32
    %39 = vector.broadcast %cst_17 : f32 to vector<16x128xf32>
    %40 = arith.addf %39, %38 : vector<16x128xf32>
    %41 = arith.mulf %35, %40 : vector<16x128xf32>
    %42 = arith.truncf %41 : vector<16x128xf32> to vector<16x128xbf16>
    %c0_18 = arith.constant 0 : index
    %c0_19 = arith.constant 0 : index
    %43 = vector.load %arg6[%c0_18, %c0_19] : memref<128x128xbf16, #tpu.memory_space<vmem>>, vector<128x128xbf16>
    %cst_20 = arith.constant dense<0.000000e+00> : vector<16x128xf32>
    %44 = tpu.matmul %42, %43, %cst_20 {dimension_numbers = #tpu.dot_dimension_numbers<[1], [0], [0], [1], [0, 0, 1, 1], [], []>} : vector<16x128xbf16>, vector<128x128xbf16>, vector<16x128xf32> -> vector<16x128xf32>
    %c0_21 = arith.constant 0 : index
    %c0_22 = arith.constant 0 : index
    %45 = vector.load %arg7[%c0_21, %c0_22] : memref<1x128xf32, #tpu.memory_space<vmem>>, vector<1x128xf32>
    %46 = vector.broadcast %45 : vector<1x128xf32> to vector<16x128xf32>
    %47 = arith.addf %44, %46 : vector<16x128xf32>
    %c0_23 = arith.constant 0 : index
    %c0_24 = arith.constant 0 : index
    %48 = vector.load %arg8[%c0_23, %c0_24] : memref<16x128xf32, #tpu.memory_space<vmem>>, vector<16x128xf32>
    tpu.vector_store %arg8[%c0_23, %c0_24], %47 {strides = array<i32>} : memref<16x128xf32, #tpu.memory_space<vmem>>, vector<16x128xf32>,
    return
  }
  func.func @transform_0(%arg0: i32) -> (i32, i32) {
    %c0_i32 = arith.constant 0 : i32
    %c0_i32_0 = arith.constant 0 : i32
    return %arg0, %c0_i32 : i32, i32
  }
  func.func @transform_1(%arg0: i32) -> (i32, i32) {
    %c0_i32 = arith.constant 0 : i32
    %c0_i32_0 = arith.constant 0 : i32
    %c0_i32_1 = arith.constant 0 : i32
    return %c0_i32, %c0_i32_0 : i32, i32
  }
  func.func @transform_2(%arg0: i32) -> (i32, i32) {
    %c0_i32 = arith.constant 0 : i32
    %c0_i32_0 = arith.constant 0 : i32
    %c0_i32_1 = arith.constant 0 : i32
    return %c0_i32, %c0_i32_0 : i32, i32
  }
  func.func @transform_3(%arg0: i32) -> (i32, i32) {
    %c0_i32 = arith.constant 0 : i32
    %c0_i32_0 = arith.constant 0 : i32
    %c0_i32_1 = arith.constant 0 : i32
    return %c0_i32, %c0_i32_0 : i32, i32
  }
  func.func @transform_4(%arg0: i32) -> (i32, i32) {
    %c0_i32 = arith.constant 0 : i32
    %c0_i32_0 = arith.constant 0 : i32
    %c0_i32_1 = arith.constant 0 : i32
    return %c0_i32, %c0_i32_0 : i32, i32
  }
  func.func @transform_5(%arg0: i32) -> (i32, i32) {
    %c0_i32 = arith.constant 0 : i32
    %c0_i32_0 = arith.constant 0 : i32
    %c0_i32_1 = arith.constant 0 : i32
    return %c0_i32, %c0_i32_0 : i32, i32
  }
  func.func @transform_6(%arg0: i32) -> (i32, i32) {
    %c0_i32 = arith.constant 0 : i32
    %c0_i32_0 = arith.constant 0 : i32
    %c0_i32_1 = arith.constant 0 : i32
    return %c0_i32, %c0_i32_0 : i32, i32
  }
  func.func @transform_7(%arg0: i32) -> (i32, i32) {
    %c0_i32 = arith.constant 0 : i32
    %c0_i32_0 = arith.constant 0 : i32
    return %arg0, %c0_i32 : i32, i32
  }
}

</mosaic_0001>

<bundles_post_ra>
// kernel: tpu_custom_call.1
= control target key start
LH: loop header
LB: loop body
LE: loop exit
PB: predicated region body
PF: predicated region fallthrough
CT: control target
= control target key end

     0   :  { %12 = vsyncpa [#allocation3], 0  ;;  %s1460_s0 = inlined_call_operand.hbm [shape: f32[16,1024], index: 0, kind: input, shape index: {}]   ;;  %s1461_s1 = inlined_call_operand.hbm [shape: bf16[1024,128], index: 1, kind: input, shape index: {}]   ;;  %s1462_s2 = inlined_call_operand.vmem [shape: f32[1,128], index: 2, kind: input, shape index: {}]   ;;  %s1463_s3 = inlined_call_operand.vmem [shape: f32[1,128], index: 3, kind: input, shape index: {}]   ;;  %s1464_s4 = inlined_call_operand.vmem [shape: f32[1,128], index: 4, kind: input, shape index: {}]   ;;  %s1465_s5 = inlined_call_operand.hbm [shape: bf16[128,128], index: 5, kind: input, shape index: {}]   ;;  %s1466_s6 = inlined_call_operand.vmem [shape: f32[1,128], index: 6, kind: input, shape index: {}]   ;;  %s1467_s7 = inlined_call_operand.hbm [shape: f32[16,128], index: 7, kind: output, shape index: {}]  }
   0x1   :  { %13 = vsyncpa [#allocation6], 0 }
   0x2   :  { %14 = vsyncpa [#allocation4], 0  ;;  %s1342_s24 = smov [#allocation5]   ;;  %s1248_s28 = scalar_lea.hbm %s1461_s1, 8192 }
   0x3   :  { %s32_s25 = sshll.u32 %s1342_s24, 4  ;;  %p1249_p0 = scmp.ne.s32.totalorder %s1461_s1, %s1248_s28  ;;  %s33_s25 = int_to_ptr.vmem [resolvable:$true] %s32_s25 }
   0x4   :  { %p1252_p1 = scmp.lt.u32.totalorder %s1248_s28, %s1461_s1 }
   0x6   :  { %p1254_p2 = pnand %p1252_p1, %p1249_p0 }
   0x8   :  { %1257 = shalt.err (!%p1254_p2)
}
   0x9   :  { %s1258_s10 = scalar_lea.vmem %s33_s25, 8192  ;;  %p1263_p4 = scmp.lt.s32.totalorder %s33_s25, %s33_s25 }
   0xa   :  { %p1259_p3 = scmp.ne.s32.totalorder %s33_s25, %s1258_s10  ;;  %p1264_p5 = scmp.lt.s32.totalorder %s1258_s10, %s1258_s10 }
   0xc   :  { %p1265_p6 = por %p1264_p5, %p1263_p4 }
   0xe   :  { %p1266_p7 = pnand %p1265_p6, %p1259_p3 }
  0x10   :  { %1269 = shalt.err (!%p1266_p7)
}
  0x11   :  { %s1343_s11 = smov 64   ;;  %s1344_s12 = smov 4  }
  0x12   :  { %38 = dma.hbm_to_vmem [thread:$0]  %s1461_s1, 8192, %s33_s25, [#allocation6], %s1343_s11, %s1343_s11, %s1344_s12  }
  0x13   :  { %s1345_s15 = smov [#allocation2]   ;;  %s1270_s19 = scalar_lea.hbm %s1460_s0, 2048 }
  0x14   :  { %s20_s16 = sshll.u32 %s1345_s15, 4  ;;  %p1271_p8 = scmp.ne.s32.totalorder %s1460_s0, %s1270_s19  ;;  %s21_s16 = int_to_ptr.vmem [resolvable:$true] %s20_s16 }
  0x15   :  { %p1274_p9 = scmp.lt.u32.totalorder %s1270_s19, %s1460_s0 }
  0x17   :  { %p1276_p10 = pnand %p1274_p9, %p1271_p8 }
  0x19   :  { %1279 = shalt.err (!%p1276_p10)
}
  0x1a   :  { %s1280_s24 = scalar_lea.vmem %s21_s16, 2048  ;;  %p1285_p12 = scmp.lt.s32.totalorder %s21_s16, %s21_s16 }
  0x1b   :  { %p1281_p11 = scmp.ne.s32.totalorder %s21_s16, %s1280_s24  ;;  %p1286_p13 = scmp.lt.s32.totalorder %s1280_s24, %s1280_s24 }
  0x1d   :  { %p1287_p0 = por %p1286_p13, %p1285_p12 }
  0x1f   :  { %p1288_p1 = pnand %p1287_p0, %p1281_p11 }
  0x21   :  { %1291 = shalt.err (!%p1288_p1)
}
  0x22   :  { %s1346_s1 = smov 1024   ;;  %s1347_s27 = smov [#allocation7]  }
  0x23   :  { %26 = dma.hbm_to_vmem [thread:$0]  %s1460_s0, 2048, %s21_s16, [#allocation3], %s1346_s1, %s1346_s1, %s1343_s11  }
  0x24   :  { %s50_s28 = sshll.u32 %s1347_s27, 4  ;;  %s1292_s8 = scalar_lea.hbm %s1465_s5, 1024  ;;  %s51_s28 = int_to_ptr.vmem [resolvable:$true] %s50_s28 }
  0x25   :  { %p1293_p2 = scmp.ne.s32.totalorder %s1465_s5, %s1292_s8  ;;  %p1296_p3 = scmp.lt.u32.totalorder %s1292_s8, %s1465_s5 }
  0x27   :  { %p1298_p4 = pnand %p1296_p3, %p1293_p2 }
  0x29   :  { %1301 = shalt.err (!%p1298_p4)
}
  0x2a   :  { %s1302_s15 = scalar_lea.vmem %s51_s28, 1024  ;;  %p1307_p6 = scmp.lt.s32.totalorder %s51_s28, %s51_s28 }
  0x2b   :  { %p1303_p5 = scmp.ne.s32.totalorder %s51_s28, %s1302_s15  ;;  %p1308_p7 = scmp.lt.s32.totalorder %s1302_s15, %s1302_s15 }
  0x2d   :  { %p1309_p8 = por %p1308_p7, %p1307_p6 }
  0x2f   :  { %p1310_p9 = pnand %p1309_p8, %p1303_p5 }
  0x31   :  { %1313 = shalt.err (!%p1310_p9)
}
  0x32   :  { %56 = dma.hbm_to_vmem [thread:$0]  %s1465_s5, 1024, %s51_s28, [#allocation6], %s1343_s11, %s1343_s11, %s1344_s12  }
  0x33   :  { %1336 = dma.done.wait [#allocation3], 2048  }
  0x34   :  { %1337 = vsyncadd [#allocation3], 4294965248 }
  0x35   :  { %1338 = dma.done.wait [#allocation6], 9216  }
  0x36   :  { %1339 = vsyncadd [#allocation6], 4294958080  ;;  %v1168_v0 = vld [vmem:[#allocation5 + $0x40] sm:$0xff]   ;;  %v1172_v4 = vld [vmem:[#allocation5 + $0x48] sm:$0xff]   ;;  %vm1349_vm1 = vmmov 0   ;;  %s1350_s19 = smov [#allocation8]  }
  0x37   :  { %v1169_v1 = vld [vmem:[#allocation5 + $0xc0] sm:$0xff]   ;;  %1040 = vmatprep.subr.bf16.mxu0 %v1168_v0  ;;  %v1173_v5 = vld [vmem:[#allocation5 + $0xc8] sm:$0xff]   ;;  %v1176_v8 = vld [vmem:[#allocation5 + $0x50] sm:$0xff]   ;;  %s951_s20 = sshll.u32 %s1350_s19, 4  ;;  %s952_s20 = int_to_ptr.vmem [resolvable:$true] %s951_s20 }
  0x38   :  { %v1170_v2 = vld [vmem:[#allocation5] sm:$0xff]   ;;  %1062 = vmatprep.subr.bf16.mxu1 %v1169_v1  ;;  %v1174_v6 = vld [vmem:[#allocation5 + $0x8] sm:$0xff]   ;;  %v1177_v9 = vld [vmem:[#allocation5 + $0xd0] sm:$0xff]   ;;  %s1314_s21 = scalar_lea.vmem %s952_s20, 256  ;;  %p1319_p11 = scmp.lt.s32.totalorder %s952_s20, %s952_s20 }
  0x39   :  { %v1171_v3 = vld [vmem:[#allocation5 + $0x80] sm:$0xff]   ;;  %1041 = vmatpush3.bf16.msra.mxu0 %v1170_v2  ;;  %v1175_v7 = vld [vmem:[#allocation5 + $0x88] sm:$0xff]   ;;  %v1178_v10 = vld [vmem:[#allocation5 + $0x10] sm:$0xff]   ;;  %p1315_p10 = scmp.ne.s32.totalorder %s952_s20, %s1314_s21  ;;  %p1320_p12 = scmp.lt.s32.totalorder %s1314_s21, %s1314_s21 }
  0x3a   :  { %1063 = vmatpush3.bf16.msra.mxu1 %v1171_v3  ;;  %1042 = vmatprep.subr.bf16.mxu0 %v1172_v4  ;;  %v1179_v11 = vld [vmem:[#allocation5 + $0x90] sm:$0xff]   ;;  %v1180_v12 = vld [vmem:[#allocation5 + $0x58] sm:$0xff]   ;;  %v1184_v16 = vld [vmem:[#allocation5 + $0x60] sm:$0xff]  }
  0x3b   :  { %1064 = vmatprep.subr.bf16.mxu1 %v1173_v5  ;;  %v1181_v13 = vld [vmem:[#allocation5 + $0xd8] sm:$0xff]   ;;  %v1185_v17 = vld [vmem:[#allocation5 + $0xe0] sm:$0xff]   ;;  %v1188_v20 = vld [vmem:[#allocation5 + $0x68] sm:$0xff]   ;;  %p1321_p13 = por %p1320_p12, %p1319_p11 }
  0x3c   :  { %v1182_v14 = vld [vmem:[#allocation5 + $0x18] sm:$0xff]   ;;  %v1186_v18 = vld [vmem:[#allocation5 + $0x20] sm:$0xff]   ;;  %v1189_v21 = vld [vmem:[#allocation5 + $0xe8] sm:$0xff]  }
  0x3d   :  { %1043 = vmatpush3.bf16.msra.mxu0 %v1174_v6  ;;  %v1183_v15 = vld [vmem:[#allocation5 + $0x98] sm:$0xff]   ;;  %v1187_v19 = vld [vmem:[#allocation5 + $0xa0] sm:$0xff]   ;;  %v1190_v22 = vld [vmem:[#allocation5 + $0x28] sm:$0xff]   ;;  %p1322_p0 = pnand %p1321_p13, %p1315_p10 }
  0x3e   :  { %1065 = vmatpush3.bf16.msra.mxu1 %v1175_v7  ;;  %1044 = vmatprep.subr.bf16.mxu0 %v1176_v8  ;;  %v1191_v23 = vld [vmem:[#allocation5 + $0xa8] sm:$0xff]   ;;  %v1192_v24 = vld [vmem:[#allocation5 + $0x70] sm:$0xff]   ;;  %v1196_v28 = vld [vmem:[#allocation5 + $0x78] sm:$0xff]  }
  0x3f   :  { %1066 = vmatprep.subr.bf16.mxu1 %v1177_v9  ;;  %v1193_v25 = vld [vmem:[#allocation5 + $0xf0] sm:$0xff]   ;;  %v1197_v29 = vld [vmem:[#allocation5 + $0xf8] sm:$0xff]   ;;  %v70_v32 = vld [vmem:[#allocation2 + $0x8] sm:$0xff] }
  0x40   :  { %v1194_v26 = vld [vmem:[#allocation5 + $0x30] sm:$0xff]   ;;  %v1198_v30 = vld [vmem:[#allocation5 + $0x38] sm:$0xff]   ;;  %v78_v33 = vld [vmem:[#allocation2 + $0x48] sm:$0xff] }
  0x41   :  { %1045 = vmatpush3.bf16.msra.mxu0 %v1178_v10  ;;  %v1195_v27 = vld [vmem:[#allocation5 + $0xb0] sm:$0xff]   ;;  %v1199_v31 = vld [vmem:[#allocation5 + $0xb8] sm:$0xff]   ;;  %v86_v35 = vpack.c.bf16 %v78_v33, %v70_v32  ;;  %v69_v37 = vld [vmem:[#allocation2] sm:$0xff] }
  0x42   :  { %1067 = vmatpush3.bf16.msra.mxu1 %v1179_v11  ;;  %1046 = vmatprep.subr.bf16.mxu0 %v1180_v12  ;;  %v72_v34 = vld [vmem:[#allocation2 + $0x18] sm:$0xff]  ;;  %v77_v38 = vld [vmem:[#allocation2 + $0x40] sm:$0xff]  ;;  %v71_v41 = vld [vmem:[#allocation2 + $0x10] sm:$0xff] }
  0x43   :  { %1068 = vmatprep.subr.bf16.mxu1 %v1181_v13  ;;  %v80_v36 = vld [vmem:[#allocation2 + $0x58] sm:$0xff]  ;;  %v85_v40 = vpack.c.bf16 %v77_v38, %v69_v37  ;;  %v79_v42 = vld [vmem:[#allocation2 + $0x50] sm:$0xff]  ;;  %644 = vmatprep.mubr.bf16.mxu0 %v86_v35  ;;  %v1200_v44 = vld [vmem:[#allocation5 + $0x140] sm:$0xff]  }
  0x44   :  { %v88_v39 = vpack.c.bf16 %v80_v36, %v72_v34  ;;  %v87_v43 = vpack.c.bf16 %v79_v42, %v71_v41  ;;  %v1201_v45 = vld [vmem:[#allocation5 + $0x1c0] sm:$0xff]   ;;  %v1204_v48 = vld [vmem:[#allocation5 + $0x148] sm:$0xff]   ;;  %v1208_v52 = vld [vmem:[#allocation5 + $0x150] sm:$0xff]  }
  0x45   :  { %1047 = vmatpush3.bf16.msra.mxu0 %v1182_v14  ;;  %v1202_v46 = vld [vmem:[#allocation5 + $0x100] sm:$0xff]   ;;  %v1205_v49 = vld [vmem:[#allocation5 + $0x1c8] sm:$0xff]   ;;  %v1209_v53 = vld [vmem:[#allocation5 + $0x1d0] sm:$0xff]  }
  0x46   :  { %1069 = vmatpush3.bf16.msra.mxu1 %v1183_v15  ;;  %1048 = vmatprep.subr.bf16.mxu0 %v1184_v16  ;;  %v1203_v47 = vld [vmem:[#allocation5 + $0x180] sm:$0xff]   ;;  %v1206_v50 = vld [vmem:[#allocation5 + $0x108] sm:$0xff]   ;;  %v1210_v54 = vld [vmem:[#allocation5 + $0x110] sm:$0xff]  }
  0x47   :  { %1070 = vmatprep.subr.bf16.mxu1 %v1185_v17  ;;  %685 = vmatprep.mubr.bf16.mxu1 %v88_v39  ;;  %v1207_v51 = vld [vmem:[#allocation5 + $0x188] sm:$0xff]   ;;  %v1211_v55 = vld [vmem:[#allocation5 + $0x190] sm:$0xff]   ;;  %v1212_v56 = vld [vmem:[#allocation5 + $0x158] sm:$0xff]  }
  0x48   :  { %v1213_v57 = vld [vmem:[#allocation5 + $0x1d8] sm:$0xff]   ;;  %v1216_v60 = vld [vmem:[#allocation5 + $0x160] sm:$0xff]   ;;  %v1220_v0 = vld [vmem:[#allocation5 + $0x168] sm:$0xff]  }
  0x49   :  { %1049 = vmatpush3.bf16.msra.mxu0 %v1186_v18  ;;  %v1214_v58 = vld [vmem:[#allocation5 + $0x118] sm:$0xff]   ;;  %v1217_v61 = vld [vmem:[#allocation5 + $0x1e0] sm:$0xff]   ;;  %v1221_v1 = vld [vmem:[#allocation5 + $0x1e8] sm:$0xff]  }
  0x4a   :  { %1071 = vmatpush3.bf16.msra.mxu1 %v1187_v19  ;;  %1050 = vmatprep.subr.bf16.mxu0 %v1188_v20  ;;  %v1215_v59 = vld [vmem:[#allocation5 + $0x198] sm:$0xff]   ;;  %v1218_v62 = vld [vmem:[#allocation5 + $0x120] sm:$0xff]   ;;  %v1222_v2 = vld [vmem:[#allocation5 + $0x128] sm:$0xff]  }
  0x4b   :  { %1072 = vmatprep.subr.bf16.mxu1 %v1189_v21  ;;  %v1219_v63 = vld [vmem:[#allocation5 + $0x1a0] sm:$0xff]   ;;  %v1223_v3 = vld [vmem:[#allocation5 + $0x1a8] sm:$0xff]   ;;  %v1224_v4 = vld [vmem:[#allocation5 + $0x170] sm:$0xff]  }
  0x4c   :  { %v1225_v5 = vld [vmem:[#allocation5 + $0x1f0] sm:$0xff]   ;;  %v1228_v8 = vld [vmem:[#allocation5 + $0x178] sm:$0xff]   ;;  %v74_v12 = vld [vmem:[#allocation2 + $0x28] sm:$0xff] }
  0x4d   :  { %1051 = vmatpush3.bf16.msra.mxu0 %v1190_v22  ;;  %v1226_v6 = vld [vmem:[#allocation5 + $0x130] sm:$0xff]   ;;  %v1229_v9 = vld [vmem:[#allocation5 + $0x1f8] sm:$0xff]   ;;  %v82_v13 = vld [vmem:[#allocation2 + $0x68] sm:$0xff] }
  0x4e   :  { %1073 = vmatpush3.bf16.msra.mxu1 %v1191_v23  ;;  %1052 = vmatprep.subr.bf16.mxu0 %v1192_v24  ;;  %v1227_v7 = vld [vmem:[#allocation5 + $0x1b0] sm:$0xff]   ;;  %v1230_v10 = vld [vmem:[#allocation5 + $0x138] sm:$0xff]   ;;  %v90_v16 = vpack.c.bf16 %v82_v13, %v74_v12  ;;  %v73_v18 = vld [vmem:[#allocation2 + $0x20] sm:$0xff] }
  0x4f   :  { %1074 = vmatprep.subr.bf16.mxu1 %v1193_v25  ;;  %v1231_v11 = vld [vmem:[#allocation5 + $0x1b8] sm:$0xff]   ;;  %v81_v19 = vld [vmem:[#allocation2 + $0x60] sm:$0xff]  ;;  %v75_v20 = vld [vmem:[#allocation2 + $0x30] sm:$0xff] }
  0x50   :  { %v76_v14 = vld [vmem:[#allocation2 + $0x38] sm:$0xff]  ;;  %v89_v21 = vpack.c.bf16 %v81_v19, %v73_v18  ;;  %v83_v22 = vld [vmem:[#allocation2 + $0x70] sm:$0xff] }
  0x51   :  { %1053 = vmatpush3.bf16.msra.mxu0 %v1194_v26  ;;  %v84_v15 = vld [vmem:[#allocation2 + $0x78] sm:$0xff]  ;;  %v91_v23 = vpack.c.bf16 %v83_v22, %v75_v20  ;;  %v964_v26 = vld [vmem:[%s1462_s2] ss:$0 sm:$0xff]  ;;  %v1238_v12 = vld [vmem:[#allocation7 + $0x30] sm:$0xff]  }
  0x52   :  { %1075 = vmatpush3.bf16.msra.mxu1 %v1195_v27  ;;  %1054 = vmatprep.subr.bf16.mxu0 %v1196_v28  ;;  %v92_v17 = vpack.c.bf16 %v84_v15, %v76_v14  ;;  %v1239_v13 = vld [vmem:[#allocation7 + $0x38] sm:$0xff]   ;;  %v1029_v20 = vld [vmem:[%s1463_s3] ss:$0 sm:$0xff] }
  0x53   :  { %1076 = vmatprep.subr.bf16.mxu1 %v1197_v29 }
  0x55   :  { %1055 = vmatpush3.bf16.msra.mxu0 %v1198_v30 }
  0x56   :  { %1077 = vmatpush3.bf16.msra.mxu1 %v1199_v31  ;;  %1084 = vmatprep.subr.bf16.mxu0 %v1200_v44 }
  0x57   :  { %1106 = vmatprep.subr.bf16.mxu1 %v1201_v45 }
  0x58   :  { %645 = vmatmul.mubr.bf16.vlgmr.msra.gmra.mrb[0].mxu0 %v85_v40 }
  0x59   :  { %686 = vmatmul.mubr.bf16.vlgmr.msra.gmra.mrb[0].mxu1 %v87_v43  ;;  %1085 = vmatpush3.bf16.msra.mxu0 %v1202_v46 }
  0x5a   :  { %1107 = vmatpush3.bf16.msra.mxu1 %v1203_v47  ;;  %1086 = vmatprep.subr.bf16.mxu0 %v1204_v48 }
  0x5b   :  { %1108 = vmatprep.subr.bf16.mxu1 %v1205_v49  ;;  %726 = vmatprep.mubr.bf16.mxu0 %v90_v16 }
  0x5c   :  { %767 = vmatprep.mubr.bf16.mxu1 %v92_v17 }
  0x5d   :  { %1087 = vmatpush3.bf16.msra.mxu0 %v1206_v50 }
  0x5e   :  { %1109 = vmatpush3.bf16.msra.mxu1 %v1207_v51  ;;  %1088 = vmatprep.subr.bf16.mxu0 %v1208_v52 }
  0x5f   :  { %1110 = vmatprep.subr.bf16.mxu1 %v1209_v53 }
  0x61   :  { %1089 = vmatpush3.bf16.msra.mxu0 %v1210_v54 }
  0x62   :  { %1111 = vmatpush3.bf16.msra.mxu1 %v1211_v55  ;;  %1090 = vmatprep.subr.bf16.mxu0 %v1212_v56 }
  0x63   :  { %1112 = vmatprep.subr.bf16.mxu1 %v1213_v57  ;;  %v776_v57 = vlaneseq }
  0x65   :  { %1091 = vmatpush3.bf16.msra.mxu0 %v1214_v58  ;;  %v777_v58 = vand.u32 127, %v776_v57 }
  0x66   :  { %1113 = vmatpush3.bf16.msra.mxu1 %v1215_v59  ;;  %1092 = vmatprep.subr.bf16.mxu0 %v1216_v60 }
  0x67   :  { %1114 = vmatprep.subr.bf16.mxu1 %v1217_v61  ;;  %vm778_vm0 = vcmp.lt.s32.totalorder %v777_v58, 32 }
  0x69   :  { %1093 = vmatpush3.bf16.msra.mxu0 %v1218_v62 }
  0x6a   :  { %1115 = vmatpush3.bf16.msra.mxu1 %v1219_v63  ;;  %1094 = vmatprep.subr.bf16.mxu0 %v1220_v0 }
  0x6b   :  { %1116 = vmatprep.subr.bf16.mxu1 %v1221_v1 }
  0x6d   :  { %1095 = vmatpush3.bf16.msra.mxu0 %v1222_v2 }
  0x6e   :  { %1117 = vmatpush3.bf16.msra.mxu1 %v1223_v3  ;;  %1096 = vmatprep.subr.bf16.mxu0 %v1224_v4 }
  0x6f   :  { %1118 = vmatprep.subr.bf16.mxu1 %v1225_v5  ;;  %v1232_v5 = vld [vmem:[#allocation7] sm:$0xff]  }
  0x71   :  { %1097 = vmatpush3.bf16.msra.mxu0 %v1226_v6  ;;  %v1348_v6 = vmov 0.0  }
  0x72   :  { %1119 = vmatpush3.bf16.msra.mxu1 %v1227_v7  ;;  %1098 = vmatprep.subr.bf16.mxu0 %v1228_v8  ;;  %v1233_v7 = vld [vmem:[#allocation7 + $0x8] sm:$0xff]   ;;  %v1234_v8 = vld [vmem:[#allocation7 + $0x10] sm:$0xff]  }
  0x73   :  { %1120 = vmatprep.subr.bf16.mxu1 %v1229_v9  ;;  %v1235_v9 = vld [vmem:[#allocation7 + $0x18] sm:$0xff]  }
  0x75   :  { %1099 = vmatpush3.bf16.msra.mxu0 %v1230_v10  ;;  %v1236_v10 = vld [vmem:[#allocation7 + $0x20] sm:$0xff]  }
  0x76   :  { %1121 = vmatpush3.bf16.msra.mxu1 %v1231_v11  ;;  %1137 = vmatprep.subr.bf16.mxu0 %v1348_v6  ;;  %v1237_v11 = vld [vmem:[#allocation7 + $0x28] sm:$0xff]  }
  0x78   :  { %727 = vmatmul.mubr.bf16.vlgmr.msra.gmra.mrb[4].mxu0 %v89_v21 }
  0x79   :  { %768 = vmatmul.mubr.bf16.vlgmr.msra.gmra.mrb[4].mxu1 %v91_v23  ;;  %1138 = vmatpush3.bf16.msra.mxu0 %v1232_v5  ;;  %v1030_v23 = vld [vmem:[%s1464_s4] ss:$0 sm:$0xff] }
  0x7a   :  { %1139 = vmatprep.subr.bf16.mxu0 %v1348_v6  ;;  %1153 = vmatprep.mubr.msk.bf16.mxu0 %vm1349_vm1, %v1348_v6 }
  0x7d   :  { %1140 = vmatpush3.bf16.msra.mxu0 %v1233_v7 }
  0x7e   :  { %1141 = vmatprep.subr.bf16.mxu0 %v1348_v6 }
  0x81   :  { %1142 = vmatpush3.bf16.msra.mxu0 %v1234_v8 }
  0x82   :  { %1143 = vmatprep.subr.bf16.mxu0 %v1348_v6 }
  0x85   :  { %1144 = vmatpush3.bf16.msra.mxu0 %v1235_v9 }
  0x86   :  { %1145 = vmatprep.subr.bf16.mxu0 %v1348_v6 }
  0x89   :  { %1146 = vmatpush3.bf16.msra.mxu0 %v1236_v10 }
  0x8a   :  { %1147 = vmatprep.subr.bf16.mxu0 %v1348_v6 }
  0x8d   :  { %1148 = vmatpush3.bf16.msra.mxu0 %v1237_v11 }
  0x8e   :  { %1149 = vmatprep.subr.bf16.mxu0 %v1348_v6 }
  0x91   :  { %1150 = vmatpush3.bf16.msra.mxu0 %v1238_v12 }
  0x92   :  { %1151 = vmatprep.subr.bf16.mxu0 %v1348_v6 }
  0x95   :  { %1152 = vmatpush3.bf16.msra.mxu0 %v1239_v13 }
 0x12b   :  { %v1056_v24 = vpop.f32.mrb[0].mxu0 }
 0x12c   :  { %v1078_v25 = vpop.f32.mrb[0].mxu1  ;;  %v1057_v27 = vpop.f32.mrb[1].mxu0 }
 0x12d   :  { %v1058_v28 = vadd.f32 %v1057_v27, %v1056_v24  ;;  %v1079_v29 = vpop.f32.mrb[1].mxu1  ;;  %v1059_v30 = vpop.f32.mrb[2].mxu0 }
 0x12e   :  { %v1080_v31 = vadd.f32 %v1079_v29, %v1078_v25  ;;  %v1081_v32 = vpop.f32.mrb[2].mxu1  ;;  %v1060_v33 = vpop.f32.mrb[3].mxu0 }
 0x12f   :  { %v647_v34 = vadd.f32 %v1058_v28, %v964_v26  ;;  %v1061_v35 = vadd.f32 %v1060_v33, %v1059_v30  ;;  %v1082_v36 = vpop.f32.mrb[3].mxu1 }
 0x130   :  { %v1083_v37 = vadd.f32 %v1082_v36, %v1081_v32 }
 0x131   :  { %v688_v38 = vadd.f32 %v1080_v31, %v647_v34  ;;  %v650_v39 = vadd.f32 %v1061_v35, %v964_v26 }
 0x133   :  { %v691_v40 = vadd.f32 %v1083_v37, %v650_v39 }
 0x14b   :  { %v1100_v41 = vpop.f32.mrb[4].mxu0 }
 0x14c   :  { %v1122_v42 = vpop.f32.mrb[4].mxu1  ;;  %v1101_v43 = vpop.f32.mrb[5].mxu0 }
 0x14d   :  { %v1102_v44 = vadd.f32 %v1101_v43, %v1100_v41  ;;  %v1123_v45 = vpop.f32.mrb[5].mxu1  ;;  %v1103_v46 = vpop.f32.mrb[6].mxu0  ;;  %v1031_v41 = vld [vmem:[%s1466_s6] ss:$0 sm:$0xff] }
 0x14e   :  { %v1124_v47 = vadd.f32 %v1123_v45, %v1122_v42  ;;  %v1125_v48 = vpop.f32.mrb[6].mxu1  ;;  %v1104_v49 = vpop.f32.mrb[7].mxu0 }
 0x14f   :  { %v729_v50 = vadd.f32 %v1102_v44, %v688_v38  ;;  %v1105_v51 = vadd.f32 %v1104_v49, %v1103_v46  ;;  %v1126_v52 = vpop.f32.mrb[7].mxu1 }
 0x150   :  { %v1127_v53 = vadd.f32 %v1126_v52, %v1125_v48 }
 0x151   :  { %v732_v54 = vadd.f32 %v1105_v51, %v691_v40  ;;  %v770_v55 = vadd.f32 %v1124_v47, %v729_v50 }
 0x153   :  { %779 = vadd.xlane.f32.xlu0 %v770_v55  ;;  %v773_v56 = vadd.f32 %v1127_v53, %v732_v54 }
 0x157   :  { %781 = vadd.xlane.f32.xlu0 %v773_v56 }
 0x1e0   :  { %v780_v59 = vpop.xlane.xlu0 %779 }
 0x1e1   :  { %v783_v60 = vmul.f32 0.03125, %v780_v59 }
 0x1e3   :  { %v785_v61 = vsub.f32 %v770_v55, %v783_v60 }
 0x1e4   :  { %v782_v62 = vpop.xlane.xlu0 %781 }
 0x1e5   :  { %v784_v63 = vmul.f32 0.03125, %v782_v62  ;;  %v787_v0 = vsel %vm778_vm0, %v785_v61, 0.0 }
 0x1e6   :  { %v789_v1 = vmul.f32 %v787_v0, %v787_v0 }
 0x1e7   :  { %v786_v2 = vsub.f32 %v773_v56, %v784_v63 }
 0x1e8   :  { %791 = vadd.xlane.f32.xlu1 %v789_v1 }
 0x1e9   :  { %v788_v3 = vsel %vm778_vm0, %v786_v2, 0.0 }
 0x1ea   :  { %v790_v4 = vmul.f32 %v788_v3, %v788_v3 }
 0x1ec   :  { %793 = vadd.xlane.f32.xlu1 %v790_v4 }
 0x275   :  { %v792_v14 = vpop.xlane.xlu1 %791 }
 0x276   :  { %v795_v15 = vmul.f32 0.03125, %v792_v14 }
 0x278   :  { %v797_v16 = vadd.f32 1e-05, %v795_v15 }
 0x279   :  { %v794_v17 = vpop.xlane.xlu1 %793 }
 0x27a   :  { %1240 = vrsqrt.f32 %v797_v16  ;;  %v796_v18 = vmul.f32 0.03125, %v794_v17 }
 0x27c   :  { %v798_v19 = vadd.f32 1e-05, %v796_v18 }
 0x27e   :  { %1242 = vrsqrt.f32 %v798_v19 }
 0x284   :  { %v1241_v21 = vpop.eup %1240 }
 0x285   :  { %v808_v22 = vmul.f32 %v1241_v21, %v1029_v20 }
 0x287   :  { %v810_v24 = vmul.f32 %v808_v22, %v787_v0 }
 0x288   :  { %v1243_v25 = vpop.eup %1242 }
 0x289   :  { %v809_v26 = vmul.f32 %v1243_v25, %v1029_v20  ;;  %v819_v27 = vadd.f32 %v1030_v23, %v810_v24 }
 0x28b   :  { %v811_v28 = vmul.f32 %v809_v26, %v788_v3  ;;  %v823_v29 = vmul.f32 0.70710677, %v819_v27  ;;  %v821_v35 = vmul.f32 0.5, %v819_v27 }
 0x28d   :  { %v820_v30 = vadd.f32 %v1030_v23, %v811_v28  ;;  %1244 = verf.f32 %v823_v29 }
 0x28f   :  { %v824_v31 = vmul.f32 0.70710677, %v820_v30  ;;  %v822_v36 = vmul.f32 0.5, %v820_v30 }
 0x291   :  { %1246 = verf.f32 %v824_v31 }
 0x297   :  { %v1245_v32 = vpop.eup %1244 }
 0x298   :  { %v827_v33 = vadd.f32 1.0, %v1245_v32 }
 0x29a   :  { %v829_v38 = vmul.f32 %v827_v33, %v821_v35 }
 0x29b   :  { %v1247_v34 = vpop.eup %1246 }
 0x29c   :  { %v828_v37 = vadd.f32 1.0, %v1247_v34 }
 0x29e   :  { %v830_v39 = vmul.f32 %v828_v37, %v822_v36 }
 0x2a0   :  { %v831_v40 = vpack.c.bf16 %v830_v39, %v829_v38 }
 0x2a2   :  { %1154 = vmatmul.mubr.bf16.vlgmr.msra.gmra.mrb[8].mxu0 %v831_v40 }
 0x375   :  { %v937_v42 = vpop.f32.mrb[8].mxu0 }
 0x376   :  { %v938_v43 = vadd.f32 %v1031_v41, %v937_v42  ;;  %v1155_v44 = vpop.f32.mrb[9].mxu0 }
 0x377   :  { %v940_v45 = vpop.f32.mrb[10].mxu0 }
 0x378   :  { %944 = vst [vmem:[#allocation8] sm:$0xff] %v938_v43  ;;  %v941_v46 = vadd.f32 %v1031_v41, %v940_v45  ;;  %v1156_v47 = vpop.f32.mrb[11].mxu0 }
 0x37a   :  { %945 = vst [vmem:[#allocation8 + $0x8] sm:$0xff] %v941_v46 }
 0x37b   :  { %1325 = shalt.err (!%p1322_p0)
}
 0x37c   :  { %s1326_s23 = scalar_lea.hbm %s1467_s7, 256 }
 0x37d   :  { %p1327_p1 = scmp.ne.s32.totalorder %s1467_s7, %s1326_s23  ;;  %p1330_p2 = scmp.lt.u32.totalorder %s1326_s23, %s1467_s7 }
 0x37f   :  { %p1332_p3 = pnand %p1330_p2, %p1327_p1 }
 0x381   :  { %1335 = shalt.err (!%p1332_p3)
}
 0x382   :  { %s1351_s27 = smov 128   ;;  %s1352_s28 = smov 8  }
 0x383   :  { %957 = dma.vmem_to_hbm [thread:$0]  %s952_s20, 256, %s1467_s7, [#allocation4], %s1351_s27, %s1351_s27, %s1352_s28  }
 0x384   :  { %1340 = dma.done.wait [#allocation4], 256  }
 0x385   :  { %1341 = vsyncadd [#allocation4], 4294967040 }
 0x386   :  { %961 = vsyncpa [#allocation3], 1 }
 0x387   :  { %962 = vsyncpa [#allocation6], 1 }
 0x388   :  { %963 = vsyncpa [#allocation4], 1 }

</bundles_post_ra>
